<compile_context>
chip_gen: v6e
topology: v6e:2x2x1
jax: 0.10.0
libtpu: 0.0.40
codegen_flags: <defaults>
</compile_context>

<pallas_src>
import jax
import jax.numpy as jnp
from jax.experimental import pallas as pl
from jax.experimental.pallas import tpu as pltpu


def _round_up(x, m):
    return ((x + m - 1) // m) * m


def _default_pack2():
    """Two-samples-per-row packing is a win on v6e/v7x, a loss on v5e (MXU-bound)."""
    try:
        kind = jax.devices()[0].device_kind.lower()
    except Exception:
        return True
    return "v5" not in kind


# --------------------------------------------------------------------------- #
# Kernel (shape-generic: works for both the native-64 and packed-128 layouts)
# --------------------------------------------------------------------------- #
def autoencoder_kernel(x_ref,
                       w1_ref, b1_ref,     # Linear(in -> h)         w: bf16, b: f32
                       w23_ref, b23_ref,   # fused Linear(h -> h)    w: bf16, b: f32
                       w4_ref, b4_ref,     # Linear(h -> out)        w: bf16, b: f32
                       o_ref):
    x = x_ref[...]                                                     # (TB, in)  f32

    # encoder Linear + ReLU   (dropout == identity in eval mode)
    h1 = jnp.dot(x.astype(w1_ref.dtype), w1_ref[...],
                 preferred_element_type=jnp.float32)                   # (TB, h) f32
    h1 = jnp.maximum(h1 + b1_ref[...], 0.0)

    # fused encoder Linear(128->12) . decoder Linear(12->128), then ReLU
    h2 = jnp.dot(h1.astype(w23_ref.dtype), w23_ref[...],
                 preferred_element_type=jnp.float32)                   # (TB, h) f32
    h2 = jnp.maximum(h2 + b23_ref[...], 0.0)

    # decoder Linear + Sigmoid
    y = jnp.dot(h2.astype(w4_ref.dtype), w4_ref[...],
                preferred_element_type=jnp.float32) + b4_ref[...]      # (TB, out) f32
    o_ref[...] = jax.nn.sigmoid(y)


# --------------------------------------------------------------------------- #
# Wrapper
# --------------------------------------------------------------------------- #
def autoencoder_forward(x, kparams, *, block_rows=4096, pack2=None):
    """x: (B, 64) float32.  kparams: output of prepare_kernel_params()."""
    B = x.shape[0]
    if pack2 is None:
        pack2 = kparams.get("packed_available", False) and _default_pack2()

    if pack2:
        # Lane-dense layout: two samples per row, block-diagonal weights.
        w1, b1 = kparams["w1p"], kparams["b1p"]
        w23, b23 = kparams["w23p"], kparams["b23p"]
        w4, b4 = kparams["w4p"], kparams["b4p"]
        Bp = _round_up(B, 2)
        x_in = x if Bp == B else jnp.concatenate(
            [x, jnp.zeros((Bp - B, x.shape[1]), x.dtype)], axis=0)
        x_in = x_in.reshape(Bp // 2, 2 * x.shape[1])        # (B/2, 128), free reshape
        rows = Bp // 2
    else:
        w1, b1 = kparams["w1"], kparams["b1"]
        w23, b23 = kparams["w23"], kparams["b23"]
        w4, b4 = kparams["w4"], kparams["b4"]
        x_in = x
        rows = B

    in_dim = x_in.shape[1]
    out_dim = w4.shape[1]

    # Batch tile: large by default so DMA pipelines and the MXU M-dim fills up;
    # shrink (to a multiple of 8) for tiny test batches.
    tb = min(block_rows, _round_up(rows, 8))
    grid = (pl.cdiv(rows, tb),)

    resident = lambda shape: pl.BlockSpec(shape, lambda i: (0, 0))

    # Advisory cost estimate so XLA schedules neighboring ops around the call.
    flops = 2 * rows * (w1.shape[0] * w1.shape[1]
                        + w23.shape[0] * w23.shape[1]
                        + w4.shape[0] * w4.shape[1])
    weight_bytes = sum(int(a.size) * a.dtype.itemsize
                       for a in (w1, b1, w23, b23, w4, b4))
    bytes_accessed = rows * (in_dim + out_dim) * 4 + weight_bytes
    cost = pl.CostEstimate(flops=int(flops),
                           transcendentals=int(rows * out_dim),
                           bytes_accessed=int(bytes_accessed))

    out = pl.pallas_call(
        autoencoder_kernel,
        out_shape=jax.ShapeDtypeStruct((rows, out_dim), jnp.float32),
        grid=grid,
        in_specs=[
            pl.BlockSpec((tb, in_dim), lambda i: (i, 0)),   # x (tiled over batch)
            resident(w1.shape), resident(b1.shape),
            resident(w23.shape), resident(b23.shape),
            resident(w4.shape), resident(b4.shape),
        ],
        out_specs=pl.BlockSpec((tb, out_dim), lambda i: (i, 0)),
        compiler_params=pltpu.CompilerParams(
            dimension_semantics=("parallel",)),
        cost_estimate=cost,
    )(x_in, w1, b1, w23, b23, w4, b4)

    if pack2:
        out = out.reshape(Bp, x.shape[1])[:B]               # back to (B, 64)
    return out


# --------------------------------------------------------------------------- #
# Parameters
# --------------------------------------------------------------------------- #
def init_params(key, num_features=12):
    """PyTorch-style uniform(-1/sqrt(fan_in), 1/sqrt(fan_in)) init, f32."""
    def linear(key, fan_in, fan_out):
        kw, kb = jax.random.split(key)
        bound = 1.0 / (fan_in ** 0.5)
        # stored as (in, out); biases kept 2D (1, out) for clean VMEM layout
        w = jax.random.uniform(kw, (fan_in, fan_out), jnp.float32, -bound, bound)
        b = jax.random.uniform(kb, (1, fan_out), jnp.float32, -bound, bound)
        return w, b

    k1, k2, k3, k4 = jax.random.split(key, 4)
    w1, b1 = linear(k1, 64, 128)
    w2, b2 = linear(k2, 128, num_features)
    w3, b3 = linear(k3, num_features, 128)
    w4, b4 = linear(k4, 128, 64)
    return {"w1": w1, "b1": b1, "w2": w2, "b2": b2,
            "w3": w3, "b3": b3, "w4": w4, "b4": b4}


def prepare_kernel_params(params, *, matmul_dtype=jnp.bfloat16):
    """Fuse the 12-wide bottleneck linears (valid in eval mode: dropout = identity,
    no activation between them), pre-cast matmul operands for the MXU, and build
    block-diagonal "two samples per row" variants for the lane-dense packed path."""
    w23 = params["w2"] @ params["w3"]                       # (128, 128) f32
    b23 = params["b2"] @ params["w3"] + params["b3"]        # (1, 128)   f32

    w1 = params["w1"].astype(matmul_dtype)
    w23c = w23.astype(matmul_dtype)
    w4 = params["w4"].astype(matmul_dtype)
    b1, b4 = params["b1"], params["b4"]

    def blockdiag(w):
        z = jnp.zeros_like(w)
        return jnp.concatenate(
            [jnp.concatenate([w, z], axis=1),
             jnp.concatenate([z, w], axis=1)], axis=0)

    def tile2(b):
        return jnp.concatenate([b, b], axis=1)

    return {
        # native (64-lane) path — used on v5e
        "w1": w1, "b1": b1,
        "w23": w23c, "b23": b23,
        "w4": w4, "b4": b4,
        # packed (128/256-lane) path — used on v6e / v7x
        "w1p": blockdiag(w1),   "b1p": tile2(b1),           # (128,256), (1,256)
        "w23p": blockdiag(w23c), "b23p": tile2(b23),        # (256,256), (1,256)
        "w4p": blockdiag(w4),   "b4p": tile2(b4),           # (256,128), (1,128)
        "packed_available": True,
    }


# --------------------------------------------------------------------------- #
# References
# --------------------------------------------------------------------------- #
def reference_forward_f32(x, p):
    """Plain-JAX f32, unfused reference of the PyTorch forward (eval-mode dropout)."""
    h1 = jnp.maximum(x @ p["w1"] + p["b1"], 0.0)
    z = h1 @ p["w2"] + p["b2"]
    h2 = jnp.maximum(z @ p["w3"] + p["b3"], 0.0)
    return jax.nn.sigmoid(h2 @ p["w4"] + p["b4"])


def reference_kernel_math(x, kp):
    """Plain-JAX reference mirroring the kernel's math (fused bottleneck, bf16 dots)."""
    h1 = jnp.dot(x.astype(kp["w1"].dtype), kp["w1"],
                 preferred_element_type=jnp.float32) + kp["b1"]
    h1 = jnp.maximum(h1, 0.0)
    h2 = jnp.dot(h1.astype(kp["w23"].dtype), kp["w23"],
                 preferred_element_type=jnp.float32) + kp["b23"]
    h2 = jnp.maximum(h2, 0.0)
    y = jnp.dot(h2.astype(kp["w4"].dtype), kp["w4"],
                preferred_element_type=jnp.float32) + kp["b4"]
    return jax.nn.sigmoid(y)


# --------------------------------------------------------------------------- #
# Test harness
# --------------------------------------------------------------------------- #
if __name__ == "__main__":
    key = jax.random.PRNGKey(0)
    kx, kx2, kp = jax.random.split(key, 3)

    params = init_params(kp, num_features=12)
    kparams = prepare_kernel_params(params)

    # --- small single-block case (generation-appropriate default path) ---
    B = 8
    x = jax.random.normal(kx, (B, 64), dtype=jnp.float32)
    out = jax.block_until_ready(autoencoder_forward(x, kparams))
    assert out.shape == (B, 64), out.shape
    assert jnp.allclose(out, reference_kernel_math(x, kparams),
                        atol=1e-4, rtol=1e-4), "mismatch vs kernel-math ref"
    assert jnp.allclose(out, reference_forward_f32(x, params),
                        atol=2e-2), "mismatch vs f32 reference"

    # --- odd batch + multi-block (exercises grid, partial tiles, pack padding) ---
    B2 = 41
    x2 = jax.random.normal(kx2, (B2, 64), dtype=jnp.float32)
    for pack2 in (True, False):   # exercise both the packed and native layouts
        out2 = jax.block_until_ready(
            autoencoder_forward(x2, kparams, block_rows=16, pack2=pack2))
        assert out2.shape == (B2, 64), out2.shape
        assert jnp.allclose(out2, reference_kernel_math(x2, kparams),
                            atol=1e-4, rtol=1e-4), f"grid mismatch (pack2={pack2})"
        assert jnp.allclose(out2, reference_forward_f32(x2, params),
                            atol=2e-2), f"f32-ref mismatch (pack2={pack2})"

    print("KERNEL_OK")
</pallas_src>

<mosaic_0001>
module attributes {stable_mosaic.version = 11 : i64} {
  func.func @autoencoder_kernel(%arg0: i32, %arg1: memref<8x128xf32, #tpu.memory_space<vmem>>, %arg2: memref<128x256xbf16, #tpu.memory_space<vmem>>, %arg3: memref<1x256xf32, #tpu.memory_space<vmem>>, %arg4: memref<256x256xbf16, #tpu.memory_space<vmem>>, %arg5: memref<1x256xf32, #tpu.memory_space<vmem>>, %arg6: memref<256x128xbf16, #tpu.memory_space<vmem>>, %arg7: memref<1x128xf32, #tpu.memory_space<vmem>>, %arg8: memref<8x128xf32, #tpu.memory_space<vmem>>) attributes {dimension_semantics = [#tpu.dimension_semantics<parallel>], iteration_bounds = array<i64: 1>, scalar_prefetch = 0 : i64, scratch_operands = 0 : i64, tpu.core_type = #tpu.core_type<tc>, window_params = [{transform_indices = @transform_0, window_bounds = array<i64: 8, 128>}, {pipeline_mode = #tpu.pipeline_mode<synchronous>, transform_indices = @transform_1, window_bounds = array<i64: 128, 256>}, {pipeline_mode = #tpu.pipeline_mode<synchronous>, transform_indices = @transform_2, window_bounds = array<i64: 1, 256>}, {pipeline_mode = #tpu.pipeline_mode<synchronous>, transform_indices = @transform_3, window_bounds = array<i64: 256, 256>}, {pipeline_mode = #tpu.pipeline_mode<synchronous>, transform_indices = @transform_4, window_bounds = array<i64: 1, 256>}, {pipeline_mode = #tpu.pipeline_mode<synchronous>, transform_indices = @transform_5, window_bounds = array<i64: 256, 128>}, {pipeline_mode = #tpu.pipeline_mode<synchronous>, transform_indices = @transform_6, window_bounds = array<i64: 1, 128>}, {transform_indices = @transform_7, window_bounds = array<i64: 8, 128>}]} {
    %c0 = arith.constant 0 : index
    %c0_0 = arith.constant 0 : index
    %0 = vector.load %arg1[%c0, %c0_0] : memref<8x128xf32, #tpu.memory_space<vmem>>, vector<8x128xf32>
    %1 = arith.truncf %0 : vector<8x128xf32> to vector<8x128xbf16>
    %c0_1 = arith.constant 0 : index
    %c0_2 = arith.constant 0 : index
    %2 = vector.load %arg2[%c0_1, %c0_2] : memref<128x256xbf16, #tpu.memory_space<vmem>>, vector<128x256xbf16>
    %cst = arith.constant dense<0.000000e+00> : vector<8x256xf32>
    %3 = tpu.matmul %1, %2, %cst {dimension_numbers = #tpu.dot_dimension_numbers<[1], [0], [0], [1], [0, 0, 1, 1], [], []>} : vector<8x128xbf16>, vector<128x256xbf16>, vector<8x256xf32> -> vector<8x256xf32>
    %c0_3 = arith.constant 0 : index
    %c0_4 = arith.constant 0 : index
    %4 = vector.load %arg3[%c0_3, %c0_4] : memref<1x256xf32, #tpu.memory_space<vmem>>, vector<1x256xf32>
    %5 = vector.broadcast %4 : vector<1x256xf32> to vector<8x256xf32>
    %6 = arith.addf %3, %5 : vector<8x256xf32>
    %cst_5 = arith.constant 0.000000e+00 : f32
    %7 = vector.broadcast %cst_5 : f32 to vector<8x256xf32>
    %8 = arith.maximumf %6, %7 : vector<8x256xf32>
    %9 = arith.truncf %8 : vector<8x256xf32> to vector<8x256xbf16>
    %c0_6 = arith.constant 0 : index
    %c0_7 = arith.constant 0 : index
    %10 = vector.load %arg4[%c0_6, %c0_7] : memref<256x256xbf16, #tpu.memory_space<vmem>>, vector<256x256xbf16>
    %cst_8 = arith.constant dense<0.000000e+00> : vector<8x256xf32>
    %11 = tpu.matmul %9, %10, %cst_8 {dimension_numbers = #tpu.dot_dimension_numbers<[1], [0], [0], [1], [0, 0, 1, 1], [], []>} : vector<8x256xbf16>, vector<256x256xbf16>, vector<8x256xf32> -> vector<8x256xf32>
    %c0_9 = arith.constant 0 : index
    %c0_10 = arith.constant 0 : index
    %12 = vector.load %arg5[%c0_9, %c0_10] : memref<1x256xf32, #tpu.memory_space<vmem>>, vector<1x256xf32>
    %13 = vector.broadcast %12 : vector<1x256xf32> to vector<8x256xf32>
    %14 = arith.addf %11, %13 : vector<8x256xf32>
    %cst_11 = arith.constant 0.000000e+00 : f32
    %15 = vector.broadcast %cst_11 : f32 to vector<8x256xf32>
    %16 = arith.maximumf %14, %15 : vector<8x256xf32>
    %17 = arith.truncf %16 : vector<8x256xf32> to vector<8x256xbf16>
    %c0_12 = arith.constant 0 : index
    %c0_13 = arith.constant 0 : index
    %18 = vector.load %arg6[%c0_12, %c0_13] : memref<256x128xbf16, #tpu.memory_space<vmem>>, vector<256x128xbf16>
    %cst_14 = arith.constant dense<0.000000e+00> : vector<8x128xf32>
    %19 = tpu.matmul %17, %18, %cst_14 {dimension_numbers = #tpu.dot_dimension_numbers<[1], [0], [0], [1], [0, 0, 1, 1], [], []>} : vector<8x256xbf16>, vector<256x128xbf16>, vector<8x128xf32> -> vector<8x128xf32>
    %c0_15 = arith.constant 0 : index
    %c0_16 = arith.constant 0 : index
    %20 = vector.load %arg7[%c0_15, %c0_16] : memref<1x128xf32, #tpu.memory_space<vmem>>, vector<1x128xf32>
    %21 = vector.broadcast %20 : vector<1x128xf32> to vector<8x128xf32>
    %22 = arith.addf %19, %21 : vector<8x128xf32>
    %23 = arith.negf %22 : vector<8x128xf32>
    %24 = math.exp %23 : vector<8x128xf32>
    %cst_17 = arith.constant 1.000000e+00 : f32
    %25 = vector.broadcast %cst_17 : f32 to vector<8x128xf32>
    %26 = arith.addf %25, %24 : vector<8x128xf32>
    %27 = arith.divf %25, %26 : vector<8x128xf32>
    %c0_18 = arith.constant 0 : index
    %c0_19 = arith.constant 0 : index
    %28 = vector.load %arg8[%c0_18, %c0_19] : memref<8x128xf32, #tpu.memory_space<vmem>>, vector<8x128xf32>
    tpu.vector_store %arg8[%c0_18, %c0_19], %27 {strides = array<i32>} : memref<8x128xf32, #tpu.memory_space<vmem>>, vector<8x128xf32>,
    return
  }
  func.func @transform_0(%arg0: i32) -> (i32, i32) {
    %c0_i32 = arith.constant 0 : i32
    %c0_i32_0 = arith.constant 0 : i32
    return %arg0, %c0_i32 : i32, i32
  }
  func.func @transform_1(%arg0: i32) -> (i32, i32) {
    %c0_i32 = arith.constant 0 : i32
    %c0_i32_0 = arith.constant 0 : i32
    %c0_i32_1 = arith.constant 0 : i32
    return %c0_i32, %c0_i32_0 : i32, i32
  }
  func.func @transform_2(%arg0: i32) -> (i32, i32) {
    %c0_i32 = arith.constant 0 : i32
    %c0_i32_0 = arith.constant 0 : i32
    %c0_i32_1 = arith.constant 0 : i32
    return %c0_i32, %c0_i32_0 : i32, i32
  }
  func.func @transform_3(%arg0: i32) -> (i32, i32) {
    %c0_i32 = arith.constant 0 : i32
    %c0_i32_0 = arith.constant 0 : i32
    %c0_i32_1 = arith.constant 0 : i32
    return %c0_i32, %c0_i32_0 : i32, i32
  }
  func.func @transform_4(%arg0: i32) -> (i32, i32) {
    %c0_i32 = arith.constant 0 : i32
    %c0_i32_0 = arith.constant 0 : i32
    %c0_i32_1 = arith.constant 0 : i32
    return %c0_i32, %c0_i32_0 : i32, i32
  }
  func.func @transform_5(%arg0: i32) -> (i32, i32) {
    %c0_i32 = arith.constant 0 : i32
    %c0_i32_0 = arith.constant 0 : i32
    %c0_i32_1 = arith.constant 0 : i32
    return %c0_i32, %c0_i32_0 : i32, i32
  }
  func.func @transform_6(%arg0: i32) -> (i32, i32) {
    %c0_i32 = arith.constant 0 : i32
    %c0_i32_0 = arith.constant 0 : i32
    %c0_i32_1 = arith.constant 0 : i32
    return %c0_i32, %c0_i32_0 : i32, i32
  }
  func.func @transform_7(%arg0: i32) -> (i32, i32) {
    %c0_i32 = arith.constant 0 : i32
    %c0_i32_0 = arith.constant 0 : i32
    return %arg0, %c0_i32 : i32, i32
  }
}

</mosaic_0001>

<bundles_post_ra>
// kernel: tpu_custom_call.1
= control target key start
LH: loop header
LB: loop body
LE: loop exit
PB: predicated region body
PF: predicated region fallthrough
CT: control target
= control target key end

     0   :  { %12 = vsyncpa [#allocation3], 0  ;;  %s1075_s0 = inlined_call_operand.hbm [shape: f32[4,128], index: 0, kind: input, shape index: {}]   ;;  %s1076_s1 = inlined_call_operand.hbm [shape: bf16[128,256], index: 1, kind: input, shape index: {}]   ;;  %s1077_s2 = inlined_call_operand.vmem [shape: f32[1,256], index: 2, kind: input, shape index: {}]   ;;  %s1078_s3 = inlined_call_operand.hbm [shape: bf16[256,256], index: 3, kind: input, shape index: {}]   ;;  %s1079_s4 = inlined_call_operand.vmem [shape: f32[1,256], index: 4, kind: input, shape index: {}]   ;;  %s1080_s5 = inlined_call_operand.hbm [shape: bf16[256,128], index: 5, kind: input, shape index: {}]   ;;  %s1081_s6 = inlined_call_operand.vmem [shape: f32[1,128], index: 6, kind: input, shape index: {}]   ;;  %s1082_s7 = inlined_call_operand.hbm [shape: f32[4,128], index: 7, kind: output, shape index: {}]  }
   0x1   :  { %13 = vsyncpa [#allocation6], 0 }
   0x2   :  { %14 = vsyncpa [#allocation9], 0 }
   0x3   :  { %15 = vsyncpa [#allocation4], 0 }
   0x4   :  { %20 = vsyncadd [#allocation3], 64  ;;  %s986_s24 = smov [#allocation5]  }
   0x5   :  { %s33_s25 = sshll.u32 %s986_s24, 4  ;;  %s34_s25 = int_to_ptr.vmem [resolvable:$true] %s33_s25 }
   0x6   :  { %s886_s26 = scalar_lea.vmem %s34_s25, 2048  ;;  %p891_p1 = scmp.lt.s32.totalorder %s34_s25, %s34_s25 }
   0x7   :  { %p887_p0 = scmp.ne.s32.totalorder %s34_s25, %s886_s26  ;;  %p892_p2 = scmp.lt.s32.totalorder %s886_s26, %s886_s26 }
   0x9   :  { %p893_p3 = por %p892_p2, %p891_p1 }
   0xb   :  { %p894_p4 = pnand %p893_p3, %p887_p0 }
   0xd   :  { %897 = shalt.err (!%p894_p4)
}
   0xe   :  { %s987_s27 = smov 128   ;;  %s988_s28 = smov 8  }
   0xf   :  { %39 = dma.hbm_to_vmem [thread:$0]  %s1076_s1, 2048, %s34_s25, [#allocation6], %s987_s27, %s987_s27, %s988_s28  }
  0x10   :  { %s989_s8 = smov [#allocation2]  }
  0x11   :  { %s21_s9 = sshll.u32 %s989_s8, 4  ;;  %s22_s9 = int_to_ptr.vmem [resolvable:$true] %s21_s9 }
  0x12   :  { %s906_s10 = scalar_lea.vmem %s22_s9, 64  ;;  %s910_s11 = scalar_lea.vmem %s22_s9, 128 }
  0x13   :  { %p907_p5 = scmp.ne.s32.totalorder %s22_s9, %s906_s10  ;;  %p911_p6 = scmp.lt.s32.totalorder %s22_s9, %s22_s9 }
  0x14   :  { %p912_p7 = scmp.lt.s32.totalorder %s910_s11, %s906_s10 }
  0x16   :  { %p913_p8 = por %p912_p7, %p911_p6 }
  0x18   :  { %p914_p9 = pnand %p913_p8, %p907_p5 }
  0x1a   :  { %917 = shalt.err (!%p914_p9)
}
  0x1b   :  { %s990_s12 = smov 64   ;;  %s991_s13 = smov 4  }
  0x1c   :  { %27 = dma.hbm_to_vmem [thread:$0]  %s1075_s0, 64, %s22_s9, [#allocation3], %s990_s12, %s990_s12, %s991_s13  }
  0x1d   :  { %s992_s1 = smov [#allocation7]   ;;  %s993_s17 = smov [#allocation8]  }
  0x1e   :  { %s47_s16 = sshll.u32 %s992_s1, 4  ;;  %s61_s18 = sshll.u32 %s993_s17, 4  ;;  %s48_s16 = int_to_ptr.vmem [resolvable:$true] %s47_s16  ;;  %s62_s18 = int_to_ptr.vmem [resolvable:$true] %s61_s18 }
  0x1f   :  { %s926_s19 = scalar_lea.vmem %s48_s16, 4096  ;;  %p931_p11 = scmp.lt.s32.totalorder %s48_s16, %s48_s16 }
  0x20   :  { %p927_p10 = scmp.ne.s32.totalorder %s48_s16, %s926_s19  ;;  %p932_p12 = scmp.lt.s32.totalorder %s926_s19, %s926_s19 }
  0x22   :  { %p933_p13 = por %p932_p12, %p931_p11 }
  0x24   :  { %p934_p0 = pnand %p933_p13, %p927_p10 }
  0x26   :  { %937 = shalt.err (!%p934_p0)
}
  0x27   :  { %53 = dma.hbm_to_vmem [thread:$0]  %s1078_s3, 4096, %s48_s16, [#allocation6], %s987_s27, %s987_s27, %s988_s28  }
  0x28   :  { %s946_s0 = scalar_lea.vmem %s62_s18, 2048  ;;  %p951_p2 = scmp.lt.s32.totalorder %s62_s18, %s62_s18 }
  0x29   :  { %p947_p1 = scmp.ne.s32.totalorder %s62_s18, %s946_s0  ;;  %p952_p3 = scmp.lt.s32.totalorder %s946_s0, %s946_s0 }
  0x2b   :  { %p953_p4 = por %p952_p3, %p951_p2 }
  0x2d   :  { %p954_p5 = pnand %p953_p4, %p947_p1 }
  0x2f   :  { %957 = shalt.err (!%p954_p5)
}
  0x30   :  { %67 = dma.hbm_to_vmem [thread:$0]  %s1080_s5, 2048, %s62_s18, [#allocation9], %s990_s12, %s990_s12, %s991_s13  }
  0x31   :  { %978 = dma.done.wait [#allocation3], 128  }
  0x32   :  { %979 = vsyncadd [#allocation3], 4294967168 }
  0x33   :  { %980 = dma.done.wait [#allocation6], 6144  }
  0x34   :  { %981 = vsyncadd [#allocation6], 4294961152 }
  0x35   :  { %982 = dma.done.wait [#allocation9], 2048  }
  0x36   :  { %983 = vsyncadd [#allocation9], 4294965248  ;;  %v994_v0 = vmov 0   ;;  %v786_v1 = vld [vmem:[#allocation5 + $0x74] ss:$8 sps:$4 sm:$0xff]   ;;  %v862_v55 = vld [vmem:[#allocation8 + $0x68] sm:$0xff]   ;;  %v103_v63 = vlaneseq }
  0x37   :  { %225 = vmatprep.mubr.bf16.mxu0 %v994_v0  ;;  %v788_v2 = vld [vmem:[#allocation5 + $0x70] ss:$8 sps:$4 sm:$0xff]   ;;  %193 = vmatprep.subr.bf16.mxu0 %v786_v1  ;;  %v789_v3 = vld [vmem:[#allocation5 + $0x64] ss:$8 sps:$4 sm:$0xff]   ;;  %v791_v4 = vld [vmem:[#allocation5 + $0x60] ss:$8 sps:$4 sm:$0xff]  }
  0x38   :  { %194 = vmatpush1.bf16.msra.mxu0 %v788_v2  ;;  %v792_v5 = vld [vmem:[#allocation5 + $0x54] ss:$8 sps:$4 sm:$0xff]   ;;  %v794_v6 = vld [vmem:[#allocation5 + $0x50] ss:$8 sps:$4 sm:$0xff]   ;;  %v795_v7 = vld [vmem:[#allocation5 + $0x44] ss:$8 sps:$4 sm:$0xff]  }
  0x39   :  { %195 = vmatprep.subr.bf16.mxu0 %v789_v3  ;;  %v797_v8 = vld [vmem:[#allocation5 + $0x40] ss:$8 sps:$4 sm:$0xff]   ;;  %v798_v9 = vld [vmem:[#allocation5 + $0x34] ss:$8 sps:$4 sm:$0xff]   ;;  %v812_v11 = vld [vmem:[#allocation7 + $0x70] ss:$8 sps:$4 sm:$0xff]  }
  0x3a   :  { %v810_v10 = vld [vmem:[#allocation7 + $0x74] ss:$8 sps:$4 sm:$0xff]   ;;  %v813_v12 = vld [vmem:[#allocation7 + $0x64] ss:$8 sps:$4 sm:$0xff]   ;;  %v800_v13 = vld [vmem:[#allocation5 + $0x30] ss:$8 sps:$4 sm:$0xff]  }
  0x3b   :  { %442 = vmatprep.subr.bf16.mxu1 %v810_v10  ;;  %v815_v14 = vld [vmem:[#allocation7 + $0x60] ss:$8 sps:$4 sm:$0xff]   ;;  %v816_v15 = vld [vmem:[#allocation7 + $0x54] ss:$8 sps:$4 sm:$0xff]   ;;  %v801_v16 = vld [vmem:[#allocation5 + $0x24] ss:$8 sps:$4 sm:$0xff]  }
  0x3c   :  { %196 = vmatpush1.bf16.msra.mxu0 %v791_v4  ;;  %443 = vmatpush1.bf16.msra.mxu1 %v812_v11  ;;  %v803_v17 = vld [vmem:[#allocation5 + $0x20] ss:$8 sps:$4 sm:$0xff]   ;;  %v818_v18 = vld [vmem:[#allocation7 + $0x50] ss:$8 sps:$4 sm:$0xff]   ;;  %v819_v19 = vld [vmem:[#allocation7 + $0x44] ss:$8 sps:$4 sm:$0xff]  }
  0x3d   :  { %197 = vmatprep.subr.bf16.mxu0 %v792_v5  ;;  %444 = vmatprep.subr.bf16.mxu1 %v813_v12  ;;  %v804_v20 = vld [vmem:[#allocation5 + $0x14] ss:$8 sps:$4 sm:$0xff]   ;;  %v806_v21 = vld [vmem:[#allocation5 + $0x10] ss:$8 sps:$4 sm:$0xff]   ;;  %v821_v22 = vld [vmem:[#allocation7 + $0x40] ss:$8 sps:$4 sm:$0xff]  }
  0x3e   :  { %v822_v23 = vld [vmem:[#allocation7 + $0x34] ss:$8 sps:$4 sm:$0xff]   ;;  %v807_v24 = vld [vmem:[#allocation5 + $0x4] ss:$8 sps:$4 sm:$0xff]   ;;  %v809_v25 = vld [vmem:[#allocation5] ss:$8 sps:$4 sm:$0xff]  }
  0x3f   :  { %v83_v26 = vld [vmem:[#allocation2] sm:$0xff]  ;;  %v825_v28 = vld [vmem:[#allocation7 + $0x24] ss:$8 sps:$4 sm:$0xff]   ;;  %v827_v29 = vld [vmem:[#allocation7 + $0x20] ss:$8 sps:$4 sm:$0xff]   ;;  %v104_v0 = vshrl.u32 %v103_v63, 7 }
  0x40   :  { %198 = vmatpush1.bf16.msra.mxu0 %v794_v6  ;;  %445 = vmatpush1.bf16.msra.mxu1 %v815_v14  ;;  %v824_v27 = vld [vmem:[#allocation7 + $0x30] ss:$8 sps:$4 sm:$0xff]   ;;  %v828_v30 = vld [vmem:[#allocation7 + $0x14] ss:$8 sps:$4 sm:$0xff]   ;;  %v84_v31 = vpack.c.bf16 %v83_v26, %v83_v26  ;;  %v831_v33 = vld [vmem:[#allocation7 + $0x4] ss:$8 sps:$4 sm:$0xff]  }
  0x41   :  { %199 = vmatprep.subr.bf16.mxu0 %v795_v7  ;;  %446 = vmatprep.subr.bf16.mxu1 %v816_v15  ;;  %v830_v32 = vld [vmem:[#allocation7 + $0x10] ss:$8 sps:$4 sm:$0xff]   ;;  %v833_v34 = vld [vmem:[#allocation7] ss:$8 sps:$4 sm:$0xff]   ;;  %v834_v35 = vld [vmem:[#allocation7 + $0xf4] ss:$8 sps:$4 sm:$0xff]  }
  0x42   :  { %v836_v36 = vld [vmem:[#allocation7 + $0xf0] ss:$8 sps:$4 sm:$0xff]   ;;  %v837_v37 = vld [vmem:[#allocation7 + $0xe4] ss:$8 sps:$4 sm:$0xff]   ;;  %v839_v38 = vld [vmem:[#allocation7 + $0xe0] ss:$8 sps:$4 sm:$0xff]  }
  0x43   :  { %v840_v39 = vld [vmem:[#allocation7 + $0xd4] ss:$8 sps:$4 sm:$0xff]   ;;  %v842_v40 = vld [vmem:[#allocation7 + $0xd0] ss:$8 sps:$4 sm:$0xff]   ;;  %v843_v41 = vld [vmem:[#allocation7 + $0xc4] ss:$8 sps:$4 sm:$0xff]  }
  0x44   :  { %200 = vmatpush1.bf16.msra.mxu0 %v797_v8  ;;  %447 = vmatpush1.bf16.msra.mxu1 %v818_v18  ;;  %v845_v42 = vld [vmem:[#allocation7 + $0xc0] ss:$8 sps:$4 sm:$0xff]   ;;  %v846_v43 = vld [vmem:[#allocation7 + $0xb4] ss:$8 sps:$4 sm:$0xff]   ;;  %v848_v44 = vld [vmem:[#allocation7 + $0xb0] ss:$8 sps:$4 sm:$0xff]  }
  0x45   :  { %201 = vmatprep.subr.bf16.mxu0 %v798_v9  ;;  %448 = vmatprep.subr.bf16.mxu1 %v819_v19  ;;  %v849_v45 = vld [vmem:[#allocation7 + $0xa4] ss:$8 sps:$4 sm:$0xff]   ;;  %v851_v46 = vld [vmem:[#allocation7 + $0xa0] ss:$8 sps:$4 sm:$0xff]   ;;  %v852_v47 = vld [vmem:[#allocation7 + $0x94] ss:$8 sps:$4 sm:$0xff]  }
  0x46   :  { %v854_v48 = vld [vmem:[#allocation7 + $0x90] ss:$8 sps:$4 sm:$0xff]   ;;  %v855_v49 = vld [vmem:[#allocation7 + $0x84] ss:$8 sps:$4 sm:$0xff]   ;;  %v857_v50 = vld [vmem:[#allocation7 + $0x80] ss:$8 sps:$4 sm:$0xff]  }
  0x47   :  { %v858_v51 = vld [vmem:[#allocation8 + $0x78] sm:$0xff]   ;;  %v860_v53 = vld [vmem:[#allocation8 + $0x70] sm:$0xff]   ;;  %v863_v56 = vld [vmem:[#allocation8 + $0x28] sm:$0xff]   ;;  %v105_v1 = vsub.s32 0, %v104_v0  ;;  %v109_v3 = vsub.s32 1, %v104_v0 }
  0x48   :  { %202 = vmatpush1.bf16.msra.mxu0 %v800_v13  ;;  %449 = vmatpush1.bf16.msra.mxu1 %v821_v22  ;;  %v859_v52 = vld [vmem:[#allocation8 + $0x38] sm:$0xff]   ;;  %v861_v54 = vld [vmem:[#allocation8 + $0x30] sm:$0xff]   ;;  %v864_v57 = vld [vmem:[#allocation8 + $0x60] sm:$0xff]  }
  0x49   :  { %203 = vmatprep.subr.bf16.mxu0 %v801_v16  ;;  %450 = vmatprep.subr.bf16.mxu1 %v822_v23  ;;  %v865_v58 = vld [vmem:[#allocation8 + $0x20] sm:$0xff]   ;;  %v866_v59 = vld [vmem:[#allocation8 + $0x58] sm:$0xff]   ;;  %v868_v61 = vld [vmem:[#allocation8 + $0x50] sm:$0xff]  }
  0x4a   :  { %v867_v60 = vld [vmem:[#allocation8 + $0x18] sm:$0xff]   ;;  %v869_v62 = vld [vmem:[#allocation8 + $0x10] sm:$0xff]   ;;  %v870_v16 = vld [vmem:[#allocation8 + $0x48] sm:$0xff]  }
  0x4b   :  { %v101_v2 = vld [vmem:[%s1077_s2] sm:$0x3]  ;;  %v872_v18 = vld [vmem:[#allocation8 + $0x40] sm:$0xff]  }
  0x4c   :  { %204 = vmatpush1.bf16.msra.mxu0 %v803_v17  ;;  %451 = vmatpush1.bf16.msra.mxu1 %v824_v27  ;;  %v106_v4 = vrot.slane %v101_v2, %v105_v1  ;;  %v110_v5 = vrot.slane %v101_v2, %v109_v3  ;;  %v871_v17 = vld [vmem:[#allocation8 + $0x8] sm:$0xff]   ;;  %v873_v19 = vld [vmem:[#allocation8] sm:$0xff]  }
  0x4d   :  { %205 = vmatprep.subr.bf16.mxu0 %v804_v20  ;;  %452 = vmatprep.subr.bf16.mxu1 %v825_v28  ;;  %v270_v20 = vld [vmem:[%s1079_s4] sm:$0x3] }
  0x4e   :  { %v279_v22 = vrot.slane %v270_v20, %v109_v3 }
  0x50   :  { %206 = vmatpush1.bf16.msra.mxu0 %v806_v21  ;;  %453 = vmatpush1.bf16.msra.mxu1 %v827_v29  ;;  %v275_v21 = vrot.slane %v270_v20, %v105_v1 }
  0x51   :  { %207 = vmatprep.subr.bf16.mxu0 %v807_v24  ;;  %454 = vmatprep.subr.bf16.mxu1 %v828_v30 }
  0x54   :  { %208 = vmatpush1.bf16.msra.mxu0 %v809_v25  ;;  %455 = vmatpush1.bf16.msra.mxu1 %v830_v32 }
  0x55   :  { %456 = vmatprep.subr.bf16.mxu1 %v831_v33  ;;  %754 = vmatprep.subr.bf16.mxu0 %v858_v51 }
  0x57   :  { %226 = vmatmul.mubr.bf16.vlgmr.msra.gmra.mxu0 %v84_v31 }
  0x58   :  { %457 = vmatpush1.bf16.msra.mxu1 %v833_v34  ;;  %755 = vmatpush3.bf16.msra.mxu0 %v859_v52  ;;  %v736_v34 = vld [vmem:[%s1081_s6] ss:$0 sm:$0xff] }
  0x59   :  { %458 = vmatprep.subr.bf16.mxu1 %v834_v35  ;;  %756 = vmatprep.subr.bf16.mxu0 %v860_v53 }
  0x5c   :  { %459 = vmatpush2.bf16.msra.mxu1 %v836_v36  ;;  %757 = vmatpush3.bf16.msra.mxu0 %v861_v54 }
  0x5d   :  { %460 = vmatprep.subr.bf16.mxu1 %v837_v37  ;;  %758 = vmatprep.subr.bf16.mxu0 %v862_v55 }
  0x60   :  { %461 = vmatpush2.bf16.msra.mxu1 %v839_v38  ;;  %759 = vmatpush3.bf16.msra.mxu0 %v863_v56 }
  0x61   :  { %462 = vmatprep.subr.bf16.mxu1 %v840_v39  ;;  %760 = vmatprep.subr.bf16.mxu0 %v864_v57 }
  0x64   :  { %463 = vmatpush2.bf16.msra.mxu1 %v842_v40  ;;  %761 = vmatpush3.bf16.msra.mxu0 %v865_v58 }
  0x65   :  { %464 = vmatprep.subr.bf16.mxu1 %v843_v41  ;;  %762 = vmatprep.subr.bf16.mxu0 %v866_v59 }
  0x68   :  { %465 = vmatpush2.bf16.msra.mxu1 %v845_v42  ;;  %763 = vmatpush3.bf16.msra.mxu0 %v867_v60 }
  0x69   :  { %466 = vmatprep.subr.bf16.mxu1 %v846_v43  ;;  %764 = vmatprep.subr.bf16.mxu0 %v868_v61 }
  0x6c   :  { %467 = vmatpush2.bf16.msra.mxu1 %v848_v44  ;;  %765 = vmatpush3.bf16.msra.mxu0 %v869_v62 }
  0x6d   :  { %468 = vmatprep.subr.bf16.mxu1 %v849_v45  ;;  %766 = vmatprep.subr.bf16.mxu0 %v870_v16 }
  0x70   :  { %469 = vmatpush2.bf16.msra.mxu1 %v851_v46  ;;  %767 = vmatpush3.bf16.msra.mxu0 %v871_v17 }
  0x71   :  { %470 = vmatprep.subr.bf16.mxu1 %v852_v47  ;;  %768 = vmatprep.subr.bf16.mxu0 %v872_v18 }
  0x74   :  { %471 = vmatpush2.bf16.msra.mxu1 %v854_v48  ;;  %769 = vmatpush3.bf16.msra.mxu0 %v873_v19 }
  0x75   :  { %472 = vmatprep.subr.bf16.mxu1 %v855_v49 }
  0x78   :  { %473 = vmatpush2.bf16.msra.mxu1 %v857_v50 }
 0x117   :  { %v227_v6 = vpop.f32.mrf.mxu0 }
 0x118   :  { %v228_v7 = vadd.f32 %v227_v6, %v106_v4 }
 0x119   :  { %v229_v8 = vpop.f32.mrf.mxu0 }
 0x11a   :  { %v230_v9 = vadd.f32 %v229_v8, %v110_v5  ;;  %v234_v10 = vmax.f32 %v228_v7, 0.0 }
 0x11b   :  { %v231_v11 = vpop.f32.mrf.mxu0 }
 0x11c   :  { %v235_v12 = vmax.f32 %v230_v9, 0.0  ;;  %v236_v15 = vpack.c.bf16 %v234_v10, %v234_v10 }
 0x11d   :  { %v232_v13 = vpop.f32.mrf.mxu0 }
 0x11e   :  { %v237_v14 = vpack.c.bf16 %v235_v12, %v235_v12 }
 0x120   :  { %474 = vmatprep.mubr.bf16.mxu1 %v237_v14 }
 0x121   :  { %475 = vmatmul.mubr.bf16.vlgmr.msra.gmra.mxu1 %v236_v15 }
 0x1e1   :  { %v476_v23 = vpop.f32.mrf.mxu1 }
 0x1e2   :  { %v477_v24 = vadd.f32 %v476_v23, %v275_v21 }
 0x1e3   :  { %v478_v25 = vpop.f32.mrf.mxu1 }
 0x1e4   :  { %v479_v26 = vadd.f32 %v478_v25, %v279_v22  ;;  %v483_v27 = vmax.f32 %v477_v24, 0.0 }
 0x1e5   :  { %v480_v28 = vpop.f32.mrf.mxu1 }
 0x1e6   :  { %v484_v29 = vmax.f32 %v479_v26, 0.0  ;;  %v485_v32 = vpack.c.bf16 %v483_v27, %v483_v27 }
 0x1e7   :  { %v481_v30 = vpop.f32.mrf.mxu1 }
 0x1e8   :  { %v486_v31 = vpack.c.bf16 %v484_v29, %v484_v29 }
 0x1ea   :  { %654 = vmatprep.mubr.bf16.mxu0 %v486_v31 }
 0x1eb   :  { %655 = vmatmul.mubr.bf16.vlgmr.msra.gmra.mxu0 %v485_v32 }
 0x2ab   :  { %v770_v33 = vpop.f32.mrf.mxu0 }
 0x2ad   :  { %v771_v35 = vpop.f32.mrf.mxu0 }
 0x2ae   :  { %v772_v36 = vadd.f32 %v771_v35, %v770_v33 }
 0x2af   :  { %v773_v37 = vpop.f32.mrf.mxu0 }
 0x2b0   :  { %v657_v38 = vadd.f32 %v772_v36, %v736_v34 }
 0x2b1   :  { %v774_v39 = vpop.f32.mrf.mxu0 }
 0x2b2   :  { %v753_v40 = vmul.f32 -1.442695, %v657_v38 }
 0x2b4   :  { %874 = vpow2.f32 %v753_v40 }
 0x2c1   :  { %v875_v41 = vpop.eup %874 }
 0x2c2   :  { %v665_v42 = vadd.f32 1.0, %v875_v41 }
 0x2c4   :  { %876 = vrcp.f32 %v665_v42 }
 0x2d1   :  { %v877_v43 = vpop.eup %876 }
 0x2d2   :  { %668 = vst [vmem:[#allocation10] sm:$0xff] %v877_v43 }
 0x2d3   :  { %673 = vsyncadd [#allocation4], 64  ;;  %s995_s4 = smov [#allocation10]  }
 0x2d4   :  { %s674_s27 = sshll.u32 %s995_s4, 4  ;;  %s675_s27 = int_to_ptr.vmem [resolvable:$true] %s674_s27 }
 0x2d5   :  { %s958_s28 = scalar_lea.vmem %s675_s27, 64  ;;  %s962_s29 = scalar_lea.vmem %s675_s27, 128 }
 0x2d6   :  { %p959_p6 = scmp.ne.s32.totalorder %s675_s27, %s958_s28  ;;  %p963_p7 = scmp.lt.s32.totalorder %s675_s27, %s675_s27 }
 0x2d7   :  { %p964_p8 = scmp.lt.s32.totalorder %s962_s29, %s958_s28 }
 0x2d9   :  { %p965_p9 = por %p964_p8, %p963_p7 }
 0x2db   :  { %p966_p10 = pnand %p965_p9, %p959_p6 }
 0x2dd   :  { %969 = shalt.err (!%p966_p10)
}
 0x2de   :  { %680 = dma.vmem_to_hbm [thread:$0]  %s675_s27, 64, %s1082_s7, [#allocation4], %s990_s12, %s990_s12, %s991_s13  }
 0x2df   :  { %984 = dma.done.wait [#allocation4], 128  }
 0x2e0   :  { %985 = vsyncadd [#allocation4], 4294967168 }
 0x2e1   :  { %684 = vsyncpa [#allocation3], 1 }
 0x2e2   :  { %685 = vsyncpa [#allocation6], 1 }
 0x2e3   :  { %686 = vsyncpa [#allocation9], 1 }
 0x2e4   :  { %687 = vsyncpa [#allocation4], 1 }

</bundles_post_ra>
